<compile_context>
chip_gen: v6e
topology: v6e:2x2x1
jax: 0.10.0
libtpu: 0.0.40
codegen_flags: <defaults>
</compile_context>

<pallas_src>
import functools

import jax
import jax.numpy as jnp
from jax import lax
from jax.experimental import pallas as pl
from jax.experimental.pallas import tpu as pltpu

# Model hyper-parameters (small, synthetic).
M = 4            # latent dimension
K = 3            # number of mixture components
H = 32           # hidden width of the encoder MLP
O = 2 * M * K + K            # 27 raw output columns
H_PAD = 128                  # hidden width padded to lane width
O_PAD = 128                  # output width padded to lane width


def _round_up(n, m):
    return ((n + m - 1) // m) * m


def _moge_kernel(x_ref, w1_ref, b1_ref, w2_ref, b2_ref, out_ref):
    # x_ref:  (TB, D_pad)  f32   (cast to bf16 in-kernel, hidden under DMA)
    # w1_ref: (D_pad, 128) bf16  b1_ref: (1, 128) f32
    # w2_ref: (128, 128)   bf16  b2_ref: (1, 128) f32
    # out_ref:(TB, 128)    bf16  -- lanes [0,24)=clamped means/logvars,
    #                              lanes [24,27)=softmaxed weights, rest 0.
    x = x_ref[...].astype(jnp.bfloat16)

    # encoder_net: Linear -> tanh -> Linear  (bf16 inputs, f32 MXU accumulation)
    # NOTE: tanh/exp kept in f32 for cross-generation safety (no bf16 EUP on v5e).
    h = jnp.tanh(
        jnp.dot(x, w1_ref[...], preferred_element_type=jnp.float32) + b1_ref[...]
    )
    out = jnp.dot(h.astype(jnp.bfloat16), w2_ref[...],
                  preferred_element_type=jnp.float32) + b2_ref[...]

    mk2 = 2 * M * K                                           # 24
    # (1,128) lane masks; broadcast against (TB,128) in the selects below.
    lanes = lax.broadcasted_iota(jnp.int32, (1, O_PAD), 1)
    is_ml = lanes < mk2                                       # means/logvars lanes
    is_w = jnp.logical_and(lanes >= mk2, lanes < mk2 + K)     # weight-logit lanes

    # Masked, numerically-stable softmax over the K weight lanes.
    logits = jnp.where(is_w, out + 0.001, -jnp.inf)           # +0.001 kept for parity
    mmax = jnp.max(logits, axis=-1, keepdims=True)
    e = jnp.exp(logits - mmax)                                # 0 outside weight lanes
    s = jnp.sum(e, axis=-1, keepdims=True)
    wgt = e * pl.reciprocal(s, approx=True)                   # EUP slot, not VALU div

    # Single fused select: clamp on means/logvars lanes, softmax on weight
    # lanes, 0 on padding lanes (wgt is already 0 there).
    out_ref[...] = jnp.where(is_ml, jnp.clip(out, -5.0, 5.0), wgt).astype(out_ref.dtype)


def pad_params(w1, b1, w2, b2):
    """Pad the MLP parameters to lane-dense shapes once, at init time."""
    D, Hn = w1.shape
    On = w2.shape[1]
    D_pad = _round_up(D, 128)
    w1p = jnp.zeros((D_pad, H_PAD), jnp.bfloat16).at[:D, :Hn].set(
        w1.astype(jnp.bfloat16))
    b1p = jnp.zeros((1, H_PAD), jnp.float32).at[:, :Hn].set(b1)
    w2p = jnp.zeros((H_PAD, O_PAD), jnp.bfloat16).at[:Hn, :On].set(
        w2.astype(jnp.bfloat16))
    b2p = jnp.zeros((1, O_PAD), jnp.float32).at[:, :On].set(b2)
    return w1p, b1p, w2p, b2p


def _pick_tb(B):
    """Batch tile: big tiles for big B (amortize ~0.35us/step), >=2 blocks for
    mid-size B so the parallel axis can span both TCs on v7x."""
    if B >= 4096:
        return 2048
    if B > 16:
        return _round_up(pl.cdiv(B, 2), 8)
    return _round_up(max(B, 8), 8)


@jax.jit
def mog_encoder_forward(x, w1p, b1p, w2p, b2p):
    """x: (B, F1, F2).  Returns (means (B,K,M), logvars (B,K,M), weights (B,K))."""
    B = x.shape[0]
    D = x.shape[1] * x.shape[2]
    D_pad = w1p.shape[0]

    # Flatten only; bf16 cast happens inside the kernel. Pad feature dim only
    # if needed (garbage lanes would hit zero w1 rows but could be NaN, so we
    # zero-pad explicitly).
    x_flat = x.reshape(B, D)
    if D_pad != D:
        x_flat = jnp.pad(x_flat, ((0, 0), (0, D_pad - D)))

    TB = _pick_tb(B)

    out = pl.pallas_call(
        _moge_kernel,
        out_shape=jax.ShapeDtypeStruct((B, O_PAD), jnp.bfloat16),
        grid=(pl.cdiv(B, TB),),                               # ragged last block OK
        in_specs=[
            # x tile (pipelined).  If a profile shows exposed DMA at step
            # boundaries, add pipeline_mode=pl.Buffered(3) here.
            pl.BlockSpec((TB, D_pad), lambda i: (i, 0)),
            pl.BlockSpec((D_pad, H_PAD), lambda i: (0, 0)),   # w1 (resident)
            pl.BlockSpec((1, H_PAD), lambda i: (0, 0)),       # b1
            pl.BlockSpec((H_PAD, O_PAD), lambda i: (0, 0)),   # w2 (resident)
            pl.BlockSpec((1, O_PAD), lambda i: (0, 0)),       # b2
        ],
        out_specs=pl.BlockSpec((TB, O_PAD), lambda i: (i, 0)),
        compiler_params=pltpu.CompilerParams(
            dimension_semantics=("parallel",),                # shard batch across TCs
            vmem_limit_bytes=32 * 1024 * 1024,
        ),
    )(x_flat, w1p, b1p, w2p, b2p)

    # One combined slice of the useful lanes, then cheap splits on the small array.
    mk = M * K
    useful = out[:, :O].astype(jnp.float32)
    means = useful[:, :mk].reshape(B, K, M)          # == torch .view(-1, K, M)
    logvars = useful[:, mk:2 * mk].reshape(B, K, M)
    weights = useful[:, 2 * mk:2 * mk + K]
    return means, logvars, weights


def init_params(key, D):
    k1, k2, k3, k4 = jax.random.split(key, 4)
    w1 = jax.random.normal(k1, (D, H), jnp.float32) * 0.05
    b1 = jax.random.normal(k2, (1, H), jnp.float32) * 0.01
    w2 = jax.random.normal(k3, (H, O), jnp.float32) * 0.05
    b2 = jax.random.normal(k4, (1, O), jnp.float32) * 0.01
    return w1, b1, w2, b2


def _reference_forward(x, w1, b1, w2, b2):
    """Pure-JAX reference with f32 math (PyTorch-like); kernel uses bf16 inputs
    and a bf16 output slab, so comparisons use a loose-but-meaningful tol."""
    B = x.shape[0]
    x_flat = x.reshape(B, -1)
    h = jnp.tanh(jnp.dot(x_flat, w1, preferred_element_type=jnp.float32) + b1)
    out = jnp.dot(h, w2, preferred_element_type=jnp.float32) + b2
    mk = M * K
    means = jnp.clip(out[:, :mk], -5.0, 5.0).reshape(B, K, M)
    logvars = jnp.clip(out[:, mk:2 * mk], -5.0, 5.0).reshape(B, K, M)
    weights = jax.nn.softmax(out[:, 2 * mk:] + 0.001, axis=-1)
    return means, logvars, weights


if __name__ == "__main__":
    key = jax.random.PRNGKey(0)
    kx, kp = jax.random.split(key)

    B, F1, F2 = 2, 16, 16
    x = jax.random.normal(kx, (B, F1, F2), jnp.float32)
    w1, b1, w2, b2 = init_params(kp, F1 * F2)
    w1p, b1p, w2p, b2p = pad_params(w1, b1, w2, b2)

    means, logvars, weights = mog_encoder_forward(x, w1p, b1p, w2p, b2p)
    jax.block_until_ready((means, logvars, weights))

    # Shape / semantics sanity checks.
    assert means.shape == (B, K, M)
    assert logvars.shape == (B, K, M)
    assert weights.shape == (B, K)
    assert bool(jnp.all(means <= 5.0)) and bool(jnp.all(means >= -5.0))
    assert bool(jnp.all(logvars <= 5.0)) and bool(jnp.all(logvars >= -5.0))
    assert bool(jnp.allclose(jnp.sum(weights, axis=-1), 1.0, atol=1e-2))

    # Numerical check against a pure-f32 reference (loose tol covers the bf16
    # input/weight/output casts and the approximate EUP reciprocal).
    rm, rl, rw = _reference_forward(x, w1, b1, w2, b2)
    assert bool(jnp.allclose(means, rm, rtol=2e-2, atol=2e-2))
    assert bool(jnp.allclose(logvars, rl, rtol=2e-2, atol=2e-2))
    assert bool(jnp.allclose(weights, rw, rtol=2e-2, atol=2e-2))

    # TODO(synk): rsample() (categorical sampling + gather + reparam noise) is
    # host-side stochastic glue, not implemented as a Pallas kernel.

    print("KERNEL_OK")
</pallas_src>

<mosaic_0001>
module attributes {stable_mosaic.version = 11 : i64} {
  func.func @_moge_kernel(%arg0: i32, %arg1: memref<8x256xf32, #tpu.memory_space<vmem>>, %arg2: memref<256x128xbf16, #tpu.memory_space<vmem>>, %arg3: memref<1x128xf32, #tpu.memory_space<vmem>>, %arg4: memref<128x128xbf16, #tpu.memory_space<vmem>>, %arg5: memref<1x128xf32, #tpu.memory_space<vmem>>, %arg6: memref<8x128xbf16, #tpu.memory_space<vmem>>) attributes {dimension_semantics = [#tpu.dimension_semantics<parallel>], iteration_bounds = array<i64: 1>, scalar_prefetch = 0 : i64, scratch_operands = 0 : i64, tpu.core_type = #tpu.core_type<tc>, window_params = [{transform_indices = @transform_0, window_bounds = array<i64: 8, 256>}, {pipeline_mode = #tpu.pipeline_mode<synchronous>, transform_indices = @transform_1, window_bounds = array<i64: 256, 128>}, {pipeline_mode = #tpu.pipeline_mode<synchronous>, transform_indices = @transform_2, window_bounds = array<i64: 1, 128>}, {pipeline_mode = #tpu.pipeline_mode<synchronous>, transform_indices = @transform_3, window_bounds = array<i64: 128, 128>}, {pipeline_mode = #tpu.pipeline_mode<synchronous>, transform_indices = @transform_4, window_bounds = array<i64: 1, 128>}, {transform_indices = @transform_5, window_bounds = array<i64: 8, 128>}]} {
    %c0 = arith.constant 0 : index
    %c0_0 = arith.constant 0 : index
    %0 = vector.load %arg1[%c0, %c0_0] : memref<8x256xf32, #tpu.memory_space<vmem>>, vector<8x256xf32>
    %1 = arith.truncf %0 : vector<8x256xf32> to vector<8x256xbf16>
    %c0_1 = arith.constant 0 : index
    %c0_2 = arith.constant 0 : index
    %2 = vector.load %arg2[%c0_1, %c0_2] : memref<256x128xbf16, #tpu.memory_space<vmem>>, vector<256x128xbf16>
    %cst = arith.constant dense<0.000000e+00> : vector<8x128xf32>
    %3 = tpu.matmul %1, %2, %cst {dimension_numbers = #tpu.dot_dimension_numbers<[1], [0], [0], [1], [0, 0, 1, 1], [], []>} : vector<8x256xbf16>, vector<256x128xbf16>, vector<8x128xf32> -> vector<8x128xf32>
    %c0_3 = arith.constant 0 : index
    %c0_4 = arith.constant 0 : index
    %4 = vector.load %arg3[%c0_3, %c0_4] : memref<1x128xf32, #tpu.memory_space<vmem>>, vector<1x128xf32>
    %5 = vector.broadcast %4 : vector<1x128xf32> to vector<8x128xf32>
    %6 = arith.addf %3, %5 : vector<8x128xf32>
    %7 = math.tanh %6 : vector<8x128xf32>
    %8 = arith.truncf %7 : vector<8x128xf32> to vector<8x128xbf16>
    %c0_5 = arith.constant 0 : index
    %c0_6 = arith.constant 0 : index
    %9 = vector.load %arg4[%c0_5, %c0_6] : memref<128x128xbf16, #tpu.memory_space<vmem>>, vector<128x128xbf16>
    %cst_7 = arith.constant dense<0.000000e+00> : vector<8x128xf32>
    %10 = tpu.matmul %8, %9, %cst_7 {dimension_numbers = #tpu.dot_dimension_numbers<[1], [0], [0], [1], [0, 0, 1, 1], [], []>} : vector<8x128xbf16>, vector<128x128xbf16>, vector<8x128xf32> -> vector<8x128xf32>
    %c0_8 = arith.constant 0 : index
    %c0_9 = arith.constant 0 : index
    %11 = vector.load %arg5[%c0_8, %c0_9] : memref<1x128xf32, #tpu.memory_space<vmem>>, vector<1x128xf32>
    %12 = vector.broadcast %11 : vector<1x128xf32> to vector<8x128xf32>
    %13 = arith.addf %10, %12 : vector<8x128xf32>
    %14 = tpu.iota {dimensions = array<i32: 1>} : vector<1x128xi32>
    %c24_i32 = arith.constant 24 : i32
    %15 = vector.broadcast %c24_i32 : i32 to vector<1x128xi32>
    %16 = arith.cmpi slt, %14, %15 : vector<1x128xi32>
    %c24_i32_10 = arith.constant 24 : i32
    %17 = vector.broadcast %c24_i32_10 : i32 to vector<1x128xi32>
    %18 = arith.cmpi sge, %14, %17 : vector<1x128xi32>
    %c27_i32 = arith.constant 27 : i32
    %19 = vector.broadcast %c27_i32 : i32 to vector<1x128xi32>
    %20 = arith.cmpi slt, %14, %19 : vector<1x128xi32>
    %21 = arith.andi %18, %20 : vector<1x128xi1>
    %cst_11 = arith.constant 1.000000e-03 : f32
    %22 = vector.broadcast %cst_11 : f32 to vector<8x128xf32>
    %23 = arith.addf %13, %22 : vector<8x128xf32>
    %cst_12 = arith.constant 0xFF800000 : f32
    %24 = vector.shape_cast %21 : vector<1x128xi1> to vector<1x128xi1>
    %25 = vector.broadcast %24 : vector<1x128xi1> to vector<8x128xi1>
    %26 = vector.broadcast %cst_12 : f32 to vector<8x128xf32>
    %27 = arith.select %25, %23, %26 : vector<8x128xi1>, vector<8x128xf32>
    %cst_13 = arith.constant dense<0xFF800000> : vector<8xf32>
    %28 = vector.multi_reduction <maximumf>, %27, %cst_13 [1] : vector<8x128xf32> to vector<8xf32>
    %29 = vector.shape_cast %28 : vector<8xf32> to vector<8x1xf32>
    %30 = vector.broadcast %29 : vector<8x1xf32> to vector<8x128xf32>
    %31 = arith.subf %27, %30 : vector<8x128xf32>
    %32 = math.exp %31 : vector<8x128xf32>
    %cst_14 = arith.constant dense<0.000000e+00> : vector<8xf32>
    %33 = vector.multi_reduction <add>, %32, %cst_14 [1] : vector<8x128xf32> to vector<8xf32>
    %34 = vector.shape_cast %33 : vector<8xf32> to vector<8x1xf32>
    %35 = tpu.reciprocal %34 {approx = true} : vector<8x1xf32> -> vector<8x1xf32>
    %36 = vector.broadcast %35 : vector<8x1xf32> to vector<8x128xf32>
    %37 = arith.mulf %32, %36 : vector<8x128xf32>
    %cst_15 = arith.constant -5.000000e+00 : f32
    %cst_16 = arith.constant 5.000000e+00 : f32
    %38 = vector.broadcast %cst_15 : f32 to vector<8x128xf32>
    %39 = arith.maximumf %38, %13 : vector<8x128xf32>
    %40 = vector.broadcast %cst_16 : f32 to vector<8x128xf32>
    %41 = arith.minimumf %40, %39 : vector<8x128xf32>
    %42 = vector.shape_cast %16 : vector<1x128xi1> to vector<1x128xi1>
    %43 = vector.broadcast %42 : vector<1x128xi1> to vector<8x128xi1>
    %44 = arith.select %43, %41, %37 : vector<8x128xi1>, vector<8x128xf32>
    %45 = arith.truncf %44 : vector<8x128xf32> to vector<8x128xbf16>
    %c0_17 = arith.constant 0 : index
    %c0_18 = arith.constant 0 : index
    %46 = vector.load %arg6[%c0_17, %c0_18] : memref<8x128xbf16, #tpu.memory_space<vmem>>, vector<8x128xbf16>
    tpu.vector_store %arg6[%c0_17, %c0_18], %45 {strides = array<i32>} : memref<8x128xbf16, #tpu.memory_space<vmem>>, vector<8x128xbf16>,
    return
  }
  func.func @transform_0(%arg0: i32) -> (i32, i32) {
    %c0_i32 = arith.constant 0 : i32
    %c0_i32_0 = arith.constant 0 : i32
    return %arg0, %c0_i32 : i32, i32
  }
  func.func @transform_1(%arg0: i32) -> (i32, i32) {
    %c0_i32 = arith.constant 0 : i32
    %c0_i32_0 = arith.constant 0 : i32
    %c0_i32_1 = arith.constant 0 : i32
    return %c0_i32, %c0_i32_0 : i32, i32
  }
  func.func @transform_2(%arg0: i32) -> (i32, i32) {
    %c0_i32 = arith.constant 0 : i32
    %c0_i32_0 = arith.constant 0 : i32
    %c0_i32_1 = arith.constant 0 : i32
    return %c0_i32, %c0_i32_0 : i32, i32
  }
  func.func @transform_3(%arg0: i32) -> (i32, i32) {
    %c0_i32 = arith.constant 0 : i32
    %c0_i32_0 = arith.constant 0 : i32
    %c0_i32_1 = arith.constant 0 : i32
    return %c0_i32, %c0_i32_0 : i32, i32
  }
  func.func @transform_4(%arg0: i32) -> (i32, i32) {
    %c0_i32 = arith.constant 0 : i32
    %c0_i32_0 = arith.constant 0 : i32
    %c0_i32_1 = arith.constant 0 : i32
    return %c0_i32, %c0_i32_0 : i32, i32
  }
  func.func @transform_5(%arg0: i32) -> (i32, i32) {
    %c0_i32 = arith.constant 0 : i32
    %c0_i32_0 = arith.constant 0 : i32
    return %arg0, %c0_i32 : i32, i32
  }
}

</mosaic_0001>

<bundles_post_ra>
// kernel: mog_encoder_forward.1
= control target key start
LH: loop header
LB: loop body
LE: loop exit
PB: predicated region body
PF: predicated region fallthrough
CT: control target
= control target key end

     0   :  { %10 = vsyncpa [#allocation3], 0  ;;  %s706_s0 = inlined_call_operand.vmem [shape: f32[2,256], index: 0, kind: input, shape index: {}]   ;;  %s707_s1 = inlined_call_operand.hbm [shape: bf16[256,128], index: 1, kind: input, shape index: {}]   ;;  %s708_s2 = inlined_call_operand.vmem [shape: f32[1,128], index: 2, kind: input, shape index: {}]   ;;  %s709_s3 = inlined_call_operand.hbm [shape: bf16[128,128], index: 3, kind: input, shape index: {}]   ;;  %s710_s4 = inlined_call_operand.vmem [shape: f32[1,128], index: 4, kind: input, shape index: {}]   ;;  %s711_s5 = inlined_call_operand.vmem [shape: bf16[2,128], index: 5, kind: output, shape index: {}]  }
   0x1   :  { %11 = vsyncpa [#allocation5], 0  ;;  %s634_s18 = smov [#allocation2]  }
   0x2   :  { %s19_s19 = sshll.u32 %s634_s18, 4  ;;  %s20_s19 = int_to_ptr.vmem [resolvable:$true] %s19_s19 }
   0x3   :  { %s598_s20 = scalar_lea.vmem %s20_s19, 2048  ;;  %p603_p1 = scmp.lt.s32.totalorder %s20_s19, %s20_s19 }
   0x4   :  { %p599_p0 = scmp.ne.s32.totalorder %s20_s19, %s598_s20  ;;  %p604_p2 = scmp.lt.s32.totalorder %s598_s20, %s598_s20 }
   0x6   :  { %p605_p3 = por %p604_p2, %p603_p1 }
   0x8   :  { %p606_p4 = pnand %p605_p3, %p599_p0 }
   0xa   :  { %609 = shalt.err (!%p606_p4)
}
   0xb   :  { %s635_s21 = smov 64   ;;  %s636_s22 = smov 4  }
   0xc   :  { %25 = dma.hbm_to_vmem [thread:$0]  %s707_s1, 2048, %s20_s19, [#allocation3], %s635_s21, %s635_s21, %s636_s22  }
   0xd   :  { %s637_s25 = smov [#allocation4]  }
   0xe   :  { %s33_s26 = sshll.u32 %s637_s25, 4  ;;  %s34_s26 = int_to_ptr.vmem [resolvable:$true] %s33_s26 }
   0xf   :  { %s618_s27 = scalar_lea.vmem %s34_s26, 1024  ;;  %p623_p6 = scmp.lt.s32.totalorder %s34_s26, %s34_s26 }
  0x10   :  { %p619_p5 = scmp.ne.s32.totalorder %s34_s26, %s618_s27  ;;  %p624_p7 = scmp.lt.s32.totalorder %s618_s27, %s618_s27 }
  0x12   :  { %p625_p8 = por %p624_p7, %p623_p6 }
  0x14   :  { %p626_p9 = pnand %p625_p8, %p619_p5 }
  0x16   :  { %629 = shalt.err (!%p626_p9)
}
  0x17   :  { %39 = dma.hbm_to_vmem [thread:$0]  %s709_s3, 1024, %s34_s26, [#allocation5], %s635_s21, %s635_s21, %s636_s22  }
  0x18   :  { %630 = dma.done.wait [#allocation3], 2048  }
  0x19   :  { %631 = vsyncadd [#allocation3], 4294965248 }
  0x1a   :  { %632 = dma.done.wait [#allocation5], 1024  }
  0x1b   :  { %633 = vsyncadd [#allocation5], 4294966272  ;;  %v638_v0 = vmov 0.0   ;;  %v556_v1 = vld [vmem:[#allocation2 + $0x78] sm:$0xff]   ;;  %v558_v3 = vld [vmem:[#allocation2 + $0x70] sm:$0xff]   ;;  %v62_v7 = vlaneseq  ;;  %vm639_vm0 = vmmov 0  }
  0x1c   :  { %528 = vmatprep.subr.bf16.mxu1 %v638_v0  ;;  %v557_v2 = vld [vmem:[#allocation2 + $0x38] sm:$0xff]   ;;  %497 = vmatprep.subr.bf16.mxu0 %v556_v1  ;;  %v559_v4 = vld [vmem:[#allocation2 + $0x30] sm:$0xff]   ;;  %v560_v5 = vld [vmem:[#allocation2 + $0x68] sm:$0xff]   ;;  %v640_v56 = vmov 1966171168  }
  0x1d   :  { %498 = vmatpush3.bf16.msra.mxu0 %v557_v2  ;;  %v561_v6 = vld [vmem:[#allocation2 + $0x28] sm:$0xff]   ;;  %v562_v8 = vld [vmem:[#allocation2 + $0x60] sm:$0xff]   ;;  %v679_v10 = vshrl.u32 %v62_v7, 7  ;;  %v564_v11 = vld [vmem:[#allocation2 + $0x58] sm:$0xff]   ;;  %544 = vmatprep.mubr.msk.bf16.mxu1 %vm639_vm0, %v638_v0  ;;  %v368_v42 = vand.u32 127, %v62_v7  ;;  %v394_v57 = vunpack.c.l.s4 %v640_v56 }
  0x1e   :  { %499 = vmatprep.subr.bf16.mxu0 %v558_v3  ;;  %v563_v9 = vld [vmem:[#allocation2 + $0x20] sm:$0xff]   ;;  %v565_v12 = vld [vmem:[#allocation2 + $0x18] sm:$0xff]   ;;  %v566_v13 = vld [vmem:[#allocation2 + $0x50] sm:$0xff]  }
  0x1f   :  { %v567_v14 = vld [vmem:[#allocation2 + $0x10] sm:$0xff]   ;;  %v588_v15 = vld.sshfl [vmem:[%s706_s0] sm:$0xff pattern:$0x76325410]  ;;  %v568_v17 = vld [vmem:[#allocation2 + $0x48] sm:$0xff]   ;;  %vm370_vm1 = vcmp.ge.s32.totalorder %v368_v42, 24  ;;  %v395_v58 = vunpack.c.0.s8 %v394_v57 }
  0x20   :  { %v589_v16 = vld.sshfl [vmem:[%s706_s0 + $0x8] sm:$0xff pattern:$0x76325410]  ;;  %v574_v18 = vld [vmem:[#allocation4 + $0x38] sm:$0xff]   ;;  %v575_v19 = vld [vmem:[#allocation4 + $0x30] sm:$0xff]   ;;  %vm371_vm2 = vcmp.lt.s32.totalorder %v368_v42, 27 }
  0x21   :  { %500 = vmatpush3.bf16.msra.mxu0 %v559_v4  ;;  %529 = vmatpush3.bf16.msra.mxu1 %v574_v18  ;;  %v569_v20 = vld [vmem:[#allocation2 + $0x8] sm:$0xff]   ;;  %v74_v21 = vcombine.high %v588_v15, %v589_v16  ;;  %v570_v23 = vld [vmem:[#allocation2 + $0x40] sm:$0xff]   ;;  %v73_v24 = vcombine.low %v588_v15, %v589_v16  ;;  %v578_v29 = vld [vmem:[#allocation4 + $0x18] sm:$0xff]   ;;  %vm369_vm4 = vcmp.lt.s32.totalorder %v368_v42, 24  ;;  %v398_v62 = vsub.s32 %v395_v58, %v679_v10 }
  0x22   :  { %501 = vmatprep.subr.bf16.mxu0 %v560_v5  ;;  %530 = vmatprep.subr.bf16.mxu1 %v638_v0  ;;  %v571_v25 = vld [vmem:[#allocation2] sm:$0xff]   ;;  %v576_v27 = vld [vmem:[#allocation4 + $0x28] sm:$0xff]   ;;  %v579_v30 = vld [vmem:[#allocation4 + $0x10] sm:$0xff]  }
  0x23   :  { %v78_v22 = vpack.c.bf16 %v74_v21, %v74_v21  ;;  %v77_v26 = vpack.c.bf16 %v73_v24, %v73_v24  ;;  %v577_v28 = vld [vmem:[#allocation4 + $0x20] sm:$0xff]   ;;  %v580_v31 = vld [vmem:[#allocation4 + $0x8] sm:$0xff]   ;;  %vm372_vm3 = vmand %vm370_vm1, %vm371_vm2 }
  0x24   :  { %v581_v32 = vld [vmem:[#allocation4] sm:$0xff]  }
  0x25   :  { %502 = vmatpush3.bf16.msra.mxu0 %v561_v6  ;;  %531 = vmatpush3.bf16.msra.mxu1 %v575_v19  ;;  %v468_v34 = vld [vmem:[%s708_s2] ss:$0 sm:$0xff] }
  0x26   :  { %503 = vmatprep.subr.bf16.mxu0 %v562_v8  ;;  %246 = vmatprep.mubr.bf16.mxu0 %v78_v22  ;;  %v485_v43 = vld [vmem:[%s710_s4] ss:$0 sm:$0xff] }
  0x27   :  { %532 = vmatprep.subr.bf16.mxu1 %v638_v0 }
  0x29   :  { %504 = vmatpush3.bf16.msra.mxu0 %v563_v9  ;;  %533 = vmatpush3.bf16.msra.mxu1 %v576_v27 }
  0x2a   :  { %505 = vmatprep.subr.bf16.mxu0 %v564_v11  ;;  %534 = vmatprep.subr.bf16.mxu1 %v638_v0 }
  0x2d   :  { %506 = vmatpush3.bf16.msra.mxu0 %v565_v12  ;;  %535 = vmatpush3.bf16.msra.mxu1 %v577_v28 }
  0x2e   :  { %507 = vmatprep.subr.bf16.mxu0 %v566_v13  ;;  %536 = vmatprep.subr.bf16.mxu1 %v638_v0 }
  0x31   :  { %508 = vmatpush3.bf16.msra.mxu0 %v567_v14  ;;  %537 = vmatpush3.bf16.msra.mxu1 %v578_v29 }
  0x32   :  { %509 = vmatprep.subr.bf16.mxu0 %v568_v17  ;;  %538 = vmatprep.subr.bf16.mxu1 %v638_v0 }
  0x35   :  { %510 = vmatpush3.bf16.msra.mxu0 %v569_v20  ;;  %539 = vmatpush3.bf16.msra.mxu1 %v579_v30 }
  0x36   :  { %511 = vmatprep.subr.bf16.mxu0 %v570_v23  ;;  %540 = vmatprep.subr.bf16.mxu1 %v638_v0 }
  0x39   :  { %512 = vmatpush3.bf16.msra.mxu0 %v571_v25  ;;  %541 = vmatpush3.bf16.msra.mxu1 %v580_v31 }
  0x3a   :  { %542 = vmatprep.subr.bf16.mxu1 %v638_v0 }
  0x3c   :  { %247 = vmatmul.mubr.bf16.vlgmr.msra.gmra.mxu0 %v77_v26 }
  0x3d   :  { %543 = vmatpush3.bf16.msra.mxu1 %v581_v32 }
  0xfc   :  { %v513_v33 = vpop.f32.mrf.mxu0 }
  0xfe   :  { %v514_v35 = vpop.f32.mrf.mxu0 }
  0xff   :  { %v515_v36 = vadd.f32 %v514_v35, %v513_v33 }
 0x100   :  { %v516_v37 = vpop.f32.mrf.mxu0 }
 0x101   :  { %v249_v38 = vadd.f32 %v515_v36, %v468_v34 }
 0x102   :  { %v517_v39 = vpop.f32.mrf.mxu0 }
 0x103   :  { %582 = vtanh.f32 %v249_v38 }
 0x110   :  { %v583_v40 = vpop.eup %582 }
 0x111   :  { %v255_v41 = vpack.c.bf16 %v583_v40, %v583_v40 }
 0x113   :  { %545 = vmatmul.mubr.bf16.vlgmr.msra.gmra.mxu1 %v255_v41 }
 0x1d3   :  { %v361_v44 = vpop.f32.mrf.mxu1 }
 0x1d4   :  { %v362_v45 = vadd.f32 %v485_v43, %v361_v44 }
 0x1d5   :  { %v546_v46 = vpop.f32.mrf.mxu1 }
 0x1d6   :  { %v373_v47 = vadd.f32 0.001, %v362_v45  ;;  %v494_v60 = vclamps-f32 %v362_v45, 5.0 }
 0x1d7   :  { %v364_v48 = vpop.f32.mrf.mxu1 }
 0x1d8   :  { %v376_v49 = vsel %vm372_vm3, %v373_v47, -inf }
 0x1d9   :  { %377 = vmax.xlane.f32.xlu0 %v376_v49  ;;  %v547_v50 = vpop.f32.mrf.mxu1 }
 0x262   :  { %v378_v51 = vpop.xlane.xlu0 %377 }
 0x263   :  { %v379_v52 = vsub.f32 %v376_v49, %v378_v51 }
 0x265   :  { %v380_v53 = vmul.f32 1.442695, %v379_v52 }
 0x267   :  { %584 = vpow2.f32 %v380_v53 }
 0x274   :  { %v585_v54 = vpop.eup %584 }
 0x275   :  { %382 = vadd.xlane.f32.xlu0 %v585_v54 }
 0x2fe   :  { %v383_v55 = vpop.xlane.xlu0 %382 }
 0x2ff   :  { %586 = vrcp.f32 %v383_v55 }
 0x30c   :  { %v587_v59 = vpop.eup %586 }
 0x30d   :  { %v385_v61 = vmul.f32 %v587_v59, %v585_v54 }
 0x30f   :  { %v390_v63 = vsel %vm369_vm4, %v494_v60, %v385_v61 }
 0x310   :  { %v391_v0 = vpack.c.bf16 %v390_v63, %v390_v63 }
 0x312   :  { %v399_v1 = vrot.slane %v391_v0, %v398_v62 }
 0x314   :  { %495 = vst.sshfl [vmem:[#allocation6] sm:$0x1 pattern:$0x73625140] %v399_v1 }
 0x31b   :  { %v443_v2 = vld [vmem:[#allocation6] sm:$0x1] }
 0x31c   :  { %444 = vst [vmem:[%s711_s5] sm:$0x1] %v443_v2 }
 0x31d   :  { %462 = vsyncpa [#allocation3], 1 }
 0x31e   :  { %463 = vsyncpa [#allocation5], 1 }

</bundles_post_ra>
